<compile_context>
chip_gen: v5e
topology: v5e:2x2
jax: 0.10.0
libtpu: 0.0.40
codegen_flags: <defaults>
</compile_context>

<pallas_src>
import math

import jax
import jax.numpy as jnp
from jax.experimental import pallas as pl
from jax.experimental.pallas import tpu as pltpu

# ----------------------------- config --------------------------------------
B = 2          # batch
S = 8          # sequence length
D_MODEL = 32
NUM_HEADS = 4
D_K = D_MODEL // NUM_HEADS
D_FF = 64
D_OUT = 32     # must equal D_MODEL for the residual  x + ff_output
EPS = 1e-5
BS = B * S


def _layernorm(x, gamma, beta):
    # One-pass variance: E[x^2] - mean^2 (half the cross-lane reductions).
    mean = jnp.mean(x, axis=-1, keepdims=True)
    mean2 = jnp.mean(x * x, axis=-1, keepdims=True)
    var = mean2 - mean * mean
    return (x - mean) * jax.lax.rsqrt(var + EPS) * gamma + beta


# ----------------------------- kernel ---------------------------------------
def encoder_layer_kernel(
    q_ref, k_ref, v_ref,                              # activations (B, S, D)
    wq_ref, bq_ref, wk_ref, bk_ref, wv_ref, bv_ref,   # QKV projections (scale folded into wq/bq)
    wo_ref, bo_ref,                                   # output projection
    g1_ref, be1_ref,                                  # norm1
    w1_ref, bf1_ref, w2_ref, bf2_ref,                 # feed-forward
    g2_ref, be2_ref,                                  # norm2
    o_ref,                                            # output (B, S, D_OUT)
):
    # Fold batch into rows: (B, S, D) -> (B*S, D).  Last dim unchanged -> no relayout.
    q_in = q_ref[...].reshape(BS, D_MODEL)
    k_in = k_ref[...].reshape(BS, D_MODEL)
    v_in = v_ref[...].reshape(BS, D_MODEL)

    # --- QKV projections (batched over B; scale already folded into wq/bq) ---
    q = jnp.dot(q_in, wq_ref[...], preferred_element_type=jnp.float32) + bq_ref[...]
    k = jnp.dot(k_in, wk_ref[...], preferred_element_type=jnp.float32) + bk_ref[...]
    v = jnp.dot(v_in, wv_ref[...], preferred_element_type=jnp.float32) + bv_ref[...]

    # --- head-major layout via static lane slices: (B*S, D) -> (B*H, S, d_k) ---
    def to_heads(x):
        blocks = []
        for b in range(B):
            for h in range(NUM_HEADS):
                blocks.append(x[b * S:(b + 1) * S, h * D_K:(h + 1) * D_K])
        return jnp.stack(blocks, axis=0)                                  # (B*H, S, d_k)

    qh = to_heads(q)
    kh = to_heads(k)
    vh = to_heads(v)

    # --- scaled dot-product attention (mask=None path; scale folded upstream) ---
    scores = jnp.einsum("nqd,nkd->nqk", qh, kh,
                        preferred_element_type=jnp.float32)               # (B*H, S, S)
    m = jnp.max(scores, axis=-1, keepdims=True)
    p = jnp.exp(scores - m)
    denom = jnp.sum(p, axis=-1, keepdims=True)
    probs = p * pl.reciprocal(denom, approx=True)                         # EUP reciprocal
    attn = jnp.einsum("nqk,nkd->nqd", probs, vh,
                      preferred_element_type=jnp.float32)                 # (B*H, S, d_k)

    # --- combine heads back to (B*S, D) with static concatenation ---
    rows = []
    for b in range(B):
        rows.append(jnp.concatenate(
            [attn[b * NUM_HEADS + h] for h in range(NUM_HEADS)], axis=-1))  # (S, D)
    attn_c = jnp.concatenate(rows, axis=0)                                # (B*S, D)

    attn_out = jnp.dot(attn_c, wo_ref[...],
                       preferred_element_type=jnp.float32) + bo_ref[...]

    # --- residual + norm1  (dropout == identity, eval mode) ---
    x1 = _layernorm(q_in + attn_out, g1_ref[...], be1_ref[...])

    # --- position-wise feed-forward ---
    h1 = jnp.dot(x1, w1_ref[...], preferred_element_type=jnp.float32) + bf1_ref[...]
    h1 = jnp.maximum(h1, 0.0)
    ff = jnp.dot(h1, w2_ref[...], preferred_element_type=jnp.float32) + bf2_ref[...]

    # --- residual + norm2 ---
    x2 = _layernorm(x1 + ff, g2_ref[...], be2_ref[...])

    o_ref[...] = x2.reshape(B, S, D_OUT).astype(o_ref.dtype)
    # TODO(synk): mask path (masked_fill -1e9) not wired; forward matches mask=None.


# ----------------------------- wrapper ---------------------------------------
def encoder_layer(Q, K, V, params):
    # One-time parameter transform: fold 1/sqrt(d_k) into W_q and b_q.
    scale = 1.0 / math.sqrt(D_K)
    wq_s = params["wq"] * scale
    bq_s = params["bq"] * scale

    weight_args = (
        wq_s, bq_s, params["wk"], params["bk"],
        params["wv"], params["bv"], params["wo"], params["bo"],
        params["g1"], params["be1"],
        params["w1"], params["bf1"], params["w2"], params["bf2"],
        params["g2"], params["be2"],
    )

    # Single kernel invocation, no grid: every operand lives fully in VMEM
    # (total footprint ~30 KB), so there is no per-step pipeline overhead and
    # no double-buffering of grid-invariant weights.
    return pl.pallas_call(
        encoder_layer_kernel,
        out_shape=jax.ShapeDtypeStruct((B, S, D_OUT), jnp.float32),
    )(Q, K, V, *weight_args)


# ----------------------------- reference (pure JAX) ---------------------------
def encoder_layer_ref(Q, K, V, p):
    def lin(x, w, b):
        return x @ w + b

    q = lin(Q, p["wq"], p["bq"]).reshape(B, S, NUM_HEADS, D_K).transpose(0, 2, 1, 3)
    k = lin(K, p["wk"], p["bk"]).reshape(B, S, NUM_HEADS, D_K).transpose(0, 2, 1, 3)
    v = lin(V, p["wv"], p["bv"]).reshape(B, S, NUM_HEADS, D_K).transpose(0, 2, 1, 3)
    scores = (q @ k.transpose(0, 1, 3, 2)) / math.sqrt(D_K)
    probs = jax.nn.softmax(scores, axis=-1)
    attn = (probs @ v).transpose(0, 2, 1, 3).reshape(B, S, D_MODEL)
    attn = lin(attn, p["wo"], p["bo"])

    def ln(x, g, b):
        mu = jnp.mean(x, -1, keepdims=True)
        var = jnp.mean((x - mu) ** 2, -1, keepdims=True)
        return (x - mu) / jnp.sqrt(var + EPS) * g + b

    x1 = ln(Q + attn, p["g1"], p["be1"])
    ff = lin(jnp.maximum(lin(x1, p["w1"], p["bf1"]), 0.0), p["w2"], p["bf2"])
    return ln(x1 + ff, p["g2"], p["be2"])


# ----------------------------- main -------------------------------------------
if __name__ == "__main__":
    key = jax.random.PRNGKey(0)
    ks = jax.random.split(key, 16)

    def w(k, shape, scale=0.1):
        return jax.random.normal(k, shape, jnp.float32) * scale

    params = {
        "wq": w(ks[0], (D_MODEL, D_MODEL)), "bq": w(ks[1], (1, D_MODEL)),
        "wk": w(ks[2], (D_MODEL, D_MODEL)), "bk": w(ks[3], (1, D_MODEL)),
        "wv": w(ks[4], (D_MODEL, D_MODEL)), "bv": w(ks[5], (1, D_MODEL)),
        "wo": w(ks[6], (D_MODEL, D_MODEL)), "bo": w(ks[7], (1, D_MODEL)),
        "g1": jnp.ones((1, D_MODEL), jnp.float32), "be1": jnp.zeros((1, D_MODEL), jnp.float32),
        "w1": w(ks[8], (D_MODEL, D_FF)), "bf1": w(ks[9], (1, D_FF)),
        "w2": w(ks[10], (D_FF, D_OUT)), "bf2": w(ks[11], (1, D_OUT)),
        "g2": jnp.ones((1, D_OUT), jnp.float32), "be2": jnp.zeros((1, D_OUT), jnp.float32),
    }

    Q = jax.random.normal(ks[12], (B, S, D_MODEL), jnp.float32)
    K = jax.random.normal(ks[13], (B, S, D_MODEL), jnp.float32)
    V = jax.random.normal(ks[14], (B, S, D_MODEL), jnp.float32)

    out = jax.block_until_ready(encoder_layer(Q, K, V, params))
    ref = jax.block_until_ready(encoder_layer_ref(Q, K, V, params))

    assert out.shape == (B, S, D_OUT)
    # Tolerance widened slightly vs 1e-4 to accommodate the EUP approximate
    # reciprocal in the softmax and the one-pass LayerNorm variance.
    assert jnp.allclose(out, ref, rtol=2e-3, atol=2e-3), (
        "mismatch vs JAX reference, max abs err "
        f"{float(jnp.max(jnp.abs(out - ref)))}")
    print("KERNEL_OK")
</pallas_src>

<mosaic_0001>
module attributes {stable_mosaic.version = 11 : i64} {
  func.func @encoder_layer_kernel(%arg0: memref<2x8x32xf32, #tpu.memory_space<vmem>>, %arg1: memref<2x8x32xf32, #tpu.memory_space<vmem>>, %arg2: memref<2x8x32xf32, #tpu.memory_space<vmem>>, %arg3: memref<32x32xf32, #tpu.memory_space<vmem>>, %arg4: memref<1x32xf32, #tpu.memory_space<vmem>>, %arg5: memref<32x32xf32, #tpu.memory_space<vmem>>, %arg6: memref<1x32xf32, #tpu.memory_space<vmem>>, %arg7: memref<32x32xf32, #tpu.memory_space<vmem>>, %arg8: memref<1x32xf32, #tpu.memory_space<vmem>>, %arg9: memref<32x32xf32, #tpu.memory_space<vmem>>, %arg10: memref<1x32xf32, #tpu.memory_space<vmem>>, %arg11: memref<1x32xf32, #tpu.memory_space<vmem>>, %arg12: memref<1x32xf32, #tpu.memory_space<vmem>>, %arg13: memref<32x64xf32, #tpu.memory_space<vmem>>, %arg14: memref<1x64xf32, #tpu.memory_space<vmem>>, %arg15: memref<64x32xf32, #tpu.memory_space<vmem>>, %arg16: memref<1x32xf32, #tpu.memory_space<vmem>>, %arg17: memref<1x32xf32, #tpu.memory_space<vmem>>, %arg18: memref<1x32xf32, #tpu.memory_space<vmem>>, %arg19: memref<2x8x32xf32, #tpu.memory_space<vmem>>) attributes {dimension_semantics = [], scalar_prefetch = 0 : i64, scratch_operands = 0 : i64, tpu.core_type = #tpu.core_type<tc>} {
    %c0 = arith.constant 0 : index
    %c0_0 = arith.constant 0 : index
    %c0_1 = arith.constant 0 : index
    %0 = vector.load %arg0[%c0, %c0_0, %c0_1] : memref<2x8x32xf32, #tpu.memory_space<vmem>>, vector<2x8x32xf32>
    %1 = vector.shape_cast %0 : vector<2x8x32xf32> to vector<16x32xf32>
    %c0_2 = arith.constant 0 : index
    %c0_3 = arith.constant 0 : index
    %c0_4 = arith.constant 0 : index
    %2 = vector.load %arg1[%c0_2, %c0_3, %c0_4] : memref<2x8x32xf32, #tpu.memory_space<vmem>>, vector<2x8x32xf32>
    %3 = vector.shape_cast %2 : vector<2x8x32xf32> to vector<16x32xf32>
    %c0_5 = arith.constant 0 : index
    %c0_6 = arith.constant 0 : index
    %c0_7 = arith.constant 0 : index
    %4 = vector.load %arg2[%c0_5, %c0_6, %c0_7] : memref<2x8x32xf32, #tpu.memory_space<vmem>>, vector<2x8x32xf32>
    %5 = vector.shape_cast %4 : vector<2x8x32xf32> to vector<16x32xf32>
    %c0_8 = arith.constant 0 : index
    %c0_9 = arith.constant 0 : index
    %6 = vector.load %arg3[%c0_8, %c0_9] : memref<32x32xf32, #tpu.memory_space<vmem>>, vector<32x32xf32>
    %cst = arith.constant dense<0.000000e+00> : vector<16x32xf32>
    %7 = tpu.matmul %1, %6, %cst {dimension_numbers = #tpu.dot_dimension_numbers<[1], [0], [0], [1], [0, 0, 1, 1], [], []>} : vector<16x32xf32>, vector<32x32xf32>, vector<16x32xf32> -> vector<16x32xf32>
    %c0_10 = arith.constant 0 : index
    %c0_11 = arith.constant 0 : index
    %8 = vector.load %arg4[%c0_10, %c0_11] : memref<1x32xf32, #tpu.memory_space<vmem>>, vector<1x32xf32>
    %9 = vector.broadcast %8 : vector<1x32xf32> to vector<16x32xf32>
    %10 = arith.addf %7, %9 : vector<16x32xf32>
    %c0_12 = arith.constant 0 : index
    %c0_13 = arith.constant 0 : index
    %11 = vector.load %arg5[%c0_12, %c0_13] : memref<32x32xf32, #tpu.memory_space<vmem>>, vector<32x32xf32>
    %cst_14 = arith.constant dense<0.000000e+00> : vector<16x32xf32>
    %12 = tpu.matmul %3, %11, %cst_14 {dimension_numbers = #tpu.dot_dimension_numbers<[1], [0], [0], [1], [0, 0, 1, 1], [], []>} : vector<16x32xf32>, vector<32x32xf32>, vector<16x32xf32> -> vector<16x32xf32>
    %c0_15 = arith.constant 0 : index
    %c0_16 = arith.constant 0 : index
    %13 = vector.load %arg6[%c0_15, %c0_16] : memref<1x32xf32, #tpu.memory_space<vmem>>, vector<1x32xf32>
    %14 = vector.broadcast %13 : vector<1x32xf32> to vector<16x32xf32>
    %15 = arith.addf %12, %14 : vector<16x32xf32>
    %c0_17 = arith.constant 0 : index
    %c0_18 = arith.constant 0 : index
    %16 = vector.load %arg7[%c0_17, %c0_18] : memref<32x32xf32, #tpu.memory_space<vmem>>, vector<32x32xf32>
    %cst_19 = arith.constant dense<0.000000e+00> : vector<16x32xf32>
    %17 = tpu.matmul %5, %16, %cst_19 {dimension_numbers = #tpu.dot_dimension_numbers<[1], [0], [0], [1], [0, 0, 1, 1], [], []>} : vector<16x32xf32>, vector<32x32xf32>, vector<16x32xf32> -> vector<16x32xf32>
    %c0_20 = arith.constant 0 : index
    %c0_21 = arith.constant 0 : index
    %18 = vector.load %arg8[%c0_20, %c0_21] : memref<1x32xf32, #tpu.memory_space<vmem>>, vector<1x32xf32>
    %19 = vector.broadcast %18 : vector<1x32xf32> to vector<16x32xf32>
    %20 = arith.addf %17, %19 : vector<16x32xf32>
    %21 = vector.extract_strided_slice %10 {offsets = [0, 0], sizes = [8, 8], strides = [1, 1]} : vector<16x32xf32> to vector<8x8xf32>
    %22 = vector.extract_strided_slice %10 {offsets = [0, 8], sizes = [8, 8], strides = [1, 1]} : vector<16x32xf32> to vector<8x8xf32>
    %23 = vector.extract_strided_slice %10 {offsets = [0, 16], sizes = [8, 8], strides = [1, 1]} : vector<16x32xf32> to vector<8x8xf32>
    %24 = vector.extract_strided_slice %10 {offsets = [0, 24], sizes = [8, 8], strides = [1, 1]} : vector<16x32xf32> to vector<8x8xf32>
    %25 = vector.extract_strided_slice %10 {offsets = [8, 0], sizes = [8, 8], strides = [1, 1]} : vector<16x32xf32> to vector<8x8xf32>
    %26 = vector.extract_strided_slice %10 {offsets = [8, 8], sizes = [8, 8], strides = [1, 1]} : vector<16x32xf32> to vector<8x8xf32>
    %27 = vector.extract_strided_slice %10 {offsets = [8, 16], sizes = [8, 8], strides = [1, 1]} : vector<16x32xf32> to vector<8x8xf32>
    %28 = vector.extract_strided_slice %10 {offsets = [8, 24], sizes = [8, 8], strides = [1, 1]} : vector<16x32xf32> to vector<8x8xf32>
    %29 = vector.shape_cast %21 : vector<8x8xf32> to vector<1x8x8xf32>
    %30 = vector.shape_cast %22 : vector<8x8xf32> to vector<1x8x8xf32>
    %31 = vector.shape_cast %23 : vector<8x8xf32> to vector<1x8x8xf32>
    %32 = vector.shape_cast %24 : vector<8x8xf32> to vector<1x8x8xf32>
    %33 = vector.shape_cast %25 : vector<8x8xf32> to vector<1x8x8xf32>
    %34 = vector.shape_cast %26 : vector<8x8xf32> to vector<1x8x8xf32>
    %35 = vector.shape_cast %27 : vector<8x8xf32> to vector<1x8x8xf32>
    %36 = vector.shape_cast %28 : vector<8x8xf32> to vector<1x8x8xf32>
    %37 = tpu.concatenate %29, %30, %31, %32, %33, %34, %35, %36 in 0 : vector<1x8x8xf32>, vector<1x8x8xf32>, vector<1x8x8xf32>, vector<1x8x8xf32>, vector<1x8x8xf32>, vector<1x8x8xf32>, vector<1x8x8xf32>, vector<1x8x8xf32> -> vector<8x8x8xf32>
    %38 = vector.extract_strided_slice %15 {offsets = [0, 0], sizes = [8, 8], strides = [1, 1]} : vector<16x32xf32> to vector<8x8xf32>
    %39 = vector.extract_strided_slice %15 {offsets = [0, 8], sizes = [8, 8], strides = [1, 1]} : vector<16x32xf32> to vector<8x8xf32>
    %40 = vector.extract_strided_slice %15 {offsets = [0, 16], sizes = [8, 8], strides = [1, 1]} : vector<16x32xf32> to vector<8x8xf32>
    %41 = vector.extract_strided_slice %15 {offsets = [0, 24], sizes = [8, 8], strides = [1, 1]} : vector<16x32xf32> to vector<8x8xf32>
    %42 = vector.extract_strided_slice %15 {offsets = [8, 0], sizes = [8, 8], strides = [1, 1]} : vector<16x32xf32> to vector<8x8xf32>
    %43 = vector.extract_strided_slice %15 {offsets = [8, 8], sizes = [8, 8], strides = [1, 1]} : vector<16x32xf32> to vector<8x8xf32>
    %44 = vector.extract_strided_slice %15 {offsets = [8, 16], sizes = [8, 8], strides = [1, 1]} : vector<16x32xf32> to vector<8x8xf32>
    %45 = vector.extract_strided_slice %15 {offsets = [8, 24], sizes = [8, 8], strides = [1, 1]} : vector<16x32xf32> to vector<8x8xf32>
    %46 = vector.shape_cast %38 : vector<8x8xf32> to vector<1x8x8xf32>
    %47 = vector.shape_cast %39 : vector<8x8xf32> to vector<1x8x8xf32>
    %48 = vector.shape_cast %40 : vector<8x8xf32> to vector<1x8x8xf32>
    %49 = vector.shape_cast %41 : vector<8x8xf32> to vector<1x8x8xf32>
    %50 = vector.shape_cast %42 : vector<8x8xf32> to vector<1x8x8xf32>
    %51 = vector.shape_cast %43 : vector<8x8xf32> to vector<1x8x8xf32>
    %52 = vector.shape_cast %44 : vector<8x8xf32> to vector<1x8x8xf32>
    %53 = vector.shape_cast %45 : vector<8x8xf32> to vector<1x8x8xf32>
    %54 = tpu.concatenate %46, %47, %48, %49, %50, %51, %52, %53 in 0 : vector<1x8x8xf32>, vector<1x8x8xf32>, vector<1x8x8xf32>, vector<1x8x8xf32>, vector<1x8x8xf32>, vector<1x8x8xf32>, vector<1x8x8xf32>, vector<1x8x8xf32> -> vector<8x8x8xf32>
    %55 = vector.extract_strided_slice %20 {offsets = [0, 0], sizes = [8, 8], strides = [1, 1]} : vector<16x32xf32> to vector<8x8xf32>
    %56 = vector.extract_strided_slice %20 {offsets = [0, 8], sizes = [8, 8], strides = [1, 1]} : vector<16x32xf32> to vector<8x8xf32>
    %57 = vector.extract_strided_slice %20 {offsets = [0, 16], sizes = [8, 8], strides = [1, 1]} : vector<16x32xf32> to vector<8x8xf32>
    %58 = vector.extract_strided_slice %20 {offsets = [0, 24], sizes = [8, 8], strides = [1, 1]} : vector<16x32xf32> to vector<8x8xf32>
    %59 = vector.extract_strided_slice %20 {offsets = [8, 0], sizes = [8, 8], strides = [1, 1]} : vector<16x32xf32> to vector<8x8xf32>
    %60 = vector.extract_strided_slice %20 {offsets = [8, 8], sizes = [8, 8], strides = [1, 1]} : vector<16x32xf32> to vector<8x8xf32>
    %61 = vector.extract_strided_slice %20 {offsets = [8, 16], sizes = [8, 8], strides = [1, 1]} : vector<16x32xf32> to vector<8x8xf32>
    %62 = vector.extract_strided_slice %20 {offsets = [8, 24], sizes = [8, 8], strides = [1, 1]} : vector<16x32xf32> to vector<8x8xf32>
    %63 = vector.shape_cast %55 : vector<8x8xf32> to vector<1x8x8xf32>
    %64 = vector.shape_cast %56 : vector<8x8xf32> to vector<1x8x8xf32>
    %65 = vector.shape_cast %57 : vector<8x8xf32> to vector<1x8x8xf32>
    %66 = vector.shape_cast %58 : vector<8x8xf32> to vector<1x8x8xf32>
    %67 = vector.shape_cast %59 : vector<8x8xf32> to vector<1x8x8xf32>
    %68 = vector.shape_cast %60 : vector<8x8xf32> to vector<1x8x8xf32>
    %69 = vector.shape_cast %61 : vector<8x8xf32> to vector<1x8x8xf32>
    %70 = vector.shape_cast %62 : vector<8x8xf32> to vector<1x8x8xf32>
    %71 = tpu.concatenate %63, %64, %65, %66, %67, %68, %69, %70 in 0 : vector<1x8x8xf32>, vector<1x8x8xf32>, vector<1x8x8xf32>, vector<1x8x8xf32>, vector<1x8x8xf32>, vector<1x8x8xf32>, vector<1x8x8xf32>, vector<1x8x8xf32> -> vector<8x8x8xf32>
    "tpu.trace_start"() <{level = 10 : i32, message = "nqd,nkd->nqk"}> : () -> ()
    %cst_22 = arith.constant dense<0.000000e+00> : vector<8x8x8xf32>
    %72 = tpu.matmul %37, %54, %cst_22 {dimension_numbers = #tpu.dot_dimension_numbers<[2], [2], [1], [1], [0, 0, 0, 1, 1, 1], [0], [0]>} : vector<8x8x8xf32>, vector<8x8x8xf32>, vector<8x8x8xf32> -> vector<8x8x8xf32>
    "tpu.trace_stop"() : () -> ()
    %cst_23 = arith.constant dense<0xFF800000> : vector<8x8xf32>
    %73 = vector.multi_reduction <maximumf>, %72, %cst_23 [2] : vector<8x8x8xf32> to vector<8x8xf32>
    %74 = vector.shape_cast %73 : vector<8x8xf32> to vector<8x8x1xf32>
    %75 = vector.broadcast %74 : vector<8x8x1xf32> to vector<8x8x8xf32>
    %76 = arith.subf %72, %75 : vector<8x8x8xf32>
    %77 = math.exp %76 : vector<8x8x8xf32>
    %cst_24 = arith.constant dense<0.000000e+00> : vector<8x8xf32>
    %78 = vector.multi_reduction <add>, %77, %cst_24 [2] : vector<8x8x8xf32> to vector<8x8xf32>
    %79 = vector.shape_cast %78 : vector<8x8xf32> to vector<8x8x1xf32>
    %80 = tpu.reciprocal %79 {approx = true} : vector<8x8x1xf32> -> vector<8x8x1xf32>
    %81 = vector.broadcast %80 : vector<8x8x1xf32> to vector<8x8x8xf32>
    %82 = arith.mulf %77, %81 : vector<8x8x8xf32>
    "tpu.trace_start"() <{level = 10 : i32, message = "nqk,nkd->nqd"}> : () -> ()
    %cst_25 = arith.constant dense<0.000000e+00> : vector<8x8x8xf32>
    %83 = tpu.matmul %82, %71, %cst_25 {dimension_numbers = #tpu.dot_dimension_numbers<[2], [1], [1], [2], [0, 0, 0, 1, 1, 2], [0], [0]>} : vector<8x8x8xf32>, vector<8x8x8xf32>, vector<8x8x8xf32> -> vector<8x8x8xf32>
    "tpu.trace_stop"() : () -> ()
    %84 = vector.extract_strided_slice %83 {offsets = [0, 0, 0], sizes = [1, 8, 8], strides = [1, 1, 1]} : vector<8x8x8xf32> to vector<1x8x8xf32>
    %85 = vector.shape_cast %84 : vector<1x8x8xf32> to vector<8x8xf32>
    %86 = vector.extract_strided_slice %83 {offsets = [1, 0, 0], sizes = [1, 8, 8], strides = [1, 1, 1]} : vector<8x8x8xf32> to vector<1x8x8xf32>
    %87 = vector.shape_cast %86 : vector<1x8x8xf32> to vector<8x8xf32>
    %88 = vector.extract_strided_slice %83 {offsets = [2, 0, 0], sizes = [1, 8, 8], strides = [1, 1, 1]} : vector<8x8x8xf32> to vector<1x8x8xf32>
    %89 = vector.shape_cast %88 : vector<1x8x8xf32> to vector<8x8xf32>
    %90 = vector.extract_strided_slice %83 {offsets = [3, 0, 0], sizes = [1, 8, 8], strides = [1, 1, 1]} : vector<8x8x8xf32> to vector<1x8x8xf32>
    %91 = vector.shape_cast %90 : vector<1x8x8xf32> to vector<8x8xf32>
    %92 = tpu.concatenate %85, %87, %89, %91 in 1 : vector<8x8xf32>, vector<8x8xf32>, vector<8x8xf32>, vector<8x8xf32> -> vector<8x32xf32>
    %93 = vector.extract_strided_slice %83 {offsets = [4, 0, 0], sizes = [1, 8, 8], strides = [1, 1, 1]} : vector<8x8x8xf32> to vector<1x8x8xf32>
    %94 = vector.shape_cast %93 : vector<1x8x8xf32> to vector<8x8xf32>
    %95 = vector.extract_strided_slice %83 {offsets = [5, 0, 0], sizes = [1, 8, 8], strides = [1, 1, 1]} : vector<8x8x8xf32> to vector<1x8x8xf32>
    %96 = vector.shape_cast %95 : vector<1x8x8xf32> to vector<8x8xf32>
    %97 = vector.extract_strided_slice %83 {offsets = [6, 0, 0], sizes = [1, 8, 8], strides = [1, 1, 1]} : vector<8x8x8xf32> to vector<1x8x8xf32>
    %98 = vector.shape_cast %97 : vector<1x8x8xf32> to vector<8x8xf32>
    %99 = vector.extract_strided_slice %83 {offsets = [7, 0, 0], sizes = [1, 8, 8], strides = [1, 1, 1]} : vector<8x8x8xf32> to vector<1x8x8xf32>
    %100 = vector.shape_cast %99 : vector<1x8x8xf32> to vector<8x8xf32>
    %101 = tpu.concatenate %94, %96, %98, %100 in 1 : vector<8x8xf32>, vector<8x8xf32>, vector<8x8xf32>, vector<8x8xf32> -> vector<8x32xf32>
    %102 = tpu.concatenate %92, %101 in 0 : vector<8x32xf32>, vector<8x32xf32> -> vector<16x32xf32>
    %c0_26 = arith.constant 0 : index
    %c0_27 = arith.constant 0 : index
    %103 = vector.load %arg9[%c0_26, %c0_27] : memref<32x32xf32, #tpu.memory_space<vmem>>, vector<32x32xf32>
    %cst_28 = arith.constant dense<0.000000e+00> : vector<16x32xf32>
    %104 = tpu.matmul %102, %103, %cst_28 {dimension_numbers = #tpu.dot_dimension_numbers<[1], [0], [0], [1], [0, 0, 1, 1], [], []>} : vector<16x32xf32>, vector<32x32xf32>, vector<16x32xf32> -> vector<16x32xf32>
    %c0_29 = arith.constant 0 : index
    %c0_30 = arith.constant 0 : index
    %105 = vector.load %arg10[%c0_29, %c0_30] : memref<1x32xf32, #tpu.memory_space<vmem>>, vector<1x32xf32>
    %106 = vector.broadcast %105 : vector<1x32xf32> to vector<16x32xf32>
    %107 = arith.addf %104, %106 : vector<16x32xf32>
    %108 = arith.addf %1, %107 : vector<16x32xf32>
    %c0_31 = arith.constant 0 : index
    %c0_32 = arith.constant 0 : index
    %109 = vector.load %arg11[%c0_31, %c0_32] : memref<1x32xf32, #tpu.memory_space<vmem>>, vector<1x32xf32>
    %c0_33 = arith.constant 0 : index
    %c0_34 = arith.constant 0 : index
    %110 = vector.load %arg12[%c0_33, %c0_34] : memref<1x32xf32, #tpu.memory_space<vmem>>, vector<1x32xf32>
    %cst_35 = arith.constant dense<0.000000e+00> : vector<16xf32>
    %111 = vector.multi_reduction <add>, %108, %cst_35 [1] : vector<16x32xf32> to vector<16xf32>
    %112 = vector.shape_cast %111 : vector<16xf32> to vector<16x1xf32>
    %cst_36 = arith.constant 3.200000e+01 : f32
    %113 = vector.broadcast %cst_36 : f32 to vector<16x1xf32>
    %114 = arith.divf %112, %113 : vector<16x1xf32>
    %115 = arith.mulf %108, %108 : vector<16x32xf32>
    %cst_37 = arith.constant dense<0.000000e+00> : vector<16xf32>
    %116 = vector.multi_reduction <add>, %115, %cst_37 [1] : vector<16x32xf32> to vector<16xf32>
    %117 = vector.shape_cast %116 : vector<16xf32> to vector<16x1xf32>
    %cst_38 = arith.constant 3.200000e+01 : f32
    %118 = vector.broadcast %cst_38 : f32 to vector<16x1xf32>
    %119 = arith.divf %117, %118 : vector<16x1xf32>
    %120 = arith.mulf %114, %114 : vector<16x1xf32>
    %121 = arith.subf %119, %120 : vector<16x1xf32>
    %122 = vector.broadcast %114 : vector<16x1xf32> to vector<16x32xf32>
    %123 = arith.subf %108, %122 : vector<16x32xf32>
    %cst_39 = arith.constant 9.99999974E-6 : f32
    %124 = vector.broadcast %cst_39 : f32 to vector<16x1xf32>
    %125 = arith.addf %121, %124 : vector<16x1xf32>
    %126 = math.rsqrt %125 : vector<16x1xf32>
    %127 = vector.broadcast %126 : vector<16x1xf32> to vector<16x32xf32>
    %128 = arith.mulf %123, %127 : vector<16x32xf32>
    %129 = vector.broadcast %109 : vector<1x32xf32> to vector<16x32xf32>
    %130 = arith.mulf %128, %129 : vector<16x32xf32>
    %131 = vector.broadcast %110 : vector<1x32xf32> to vector<16x32xf32>
    %132 = arith.addf %130, %131 : vector<16x32xf32>
    %c0_40 = arith.constant 0 : index
    %c0_41 = arith.constant 0 : index
    %133 = vector.load %arg13[%c0_40, %c0_41] : memref<32x64xf32, #tpu.memory_space<vmem>>, vector<32x64xf32>
    %cst_42 = arith.constant dense<0.000000e+00> : vector<16x64xf32>
    %134 = tpu.matmul %132, %133, %cst_42 {dimension_numbers = #tpu.dot_dimension_numbers<[1], [0], [0], [1], [0, 0, 1, 1], [], []>} : vector<16x32xf32>, vector<32x64xf32>, vector<16x64xf32> -> vector<16x64xf32>
    %c0_43 = arith.constant 0 : index
    %c0_44 = arith.constant 0 : index
    %135 = vector.load %arg14[%c0_43, %c0_44] : memref<1x64xf32, #tpu.memory_space<vmem>>, vector<1x64xf32>
    %136 = vector.broadcast %135 : vector<1x64xf32> to vector<16x64xf32>
    %137 = arith.addf %134, %136 : vector<16x64xf32>
    %cst_45 = arith.constant 0.000000e+00 : f32
    %138 = vector.broadcast %cst_45 : f32 to vector<16x64xf32>
    %139 = arith.maximumf %137, %138 : vector<16x64xf32>
    %c0_46 = arith.constant 0 : index
    %c0_47 = arith.constant 0 : index
    %140 = vector.load %arg15[%c0_46, %c0_47] : memref<64x32xf32, #tpu.memory_space<vmem>>, vector<64x32xf32>
    %cst_48 = arith.constant dense<0.000000e+00> : vector<16x32xf32>
    %141 = tpu.matmul %139, %140, %cst_48 {dimension_numbers = #tpu.dot_dimension_numbers<[1], [0], [0], [1], [0, 0, 1, 1], [], []>} : vector<16x64xf32>, vector<64x32xf32>, vector<16x32xf32> -> vector<16x32xf32>
    %c0_49 = arith.constant 0 : index
    %c0_50 = arith.constant 0 : index
    %142 = vector.load %arg16[%c0_49, %c0_50] : memref<1x32xf32, #tpu.memory_space<vmem>>, vector<1x32xf32>
    %143 = vector.broadcast %142 : vector<1x32xf32> to vector<16x32xf32>
    %144 = arith.addf %141, %143 : vector<16x32xf32>
    %145 = arith.addf %132, %144 : vector<16x32xf32>
    %c0_51 = arith.constant 0 : index
    %c0_52 = arith.constant 0 : index
    %146 = vector.load %arg17[%c0_51, %c0_52] : memref<1x32xf32, #tpu.memory_space<vmem>>, vector<1x32xf32>
    %c0_53 = arith.constant 0 : index
    %c0_54 = arith.constant 0 : index
    %147 = vector.load %arg18[%c0_53, %c0_54] : memref<1x32xf32, #tpu.memory_space<vmem>>, vector<1x32xf32>
    %cst_55 = arith.constant dense<0.000000e+00> : vector<16xf32>
    %148 = vector.multi_reduction <add>, %145, %cst_55 [1] : vector<16x32xf32> to vector<16xf32>
    %149 = vector.shape_cast %148 : vector<16xf32> to vector<16x1xf32>
    %cst_56 = arith.constant 3.200000e+01 : f32
    %150 = vector.broadcast %cst_56 : f32 to vector<16x1xf32>
    %151 = arith.divf %149, %150 : vector<16x1xf32>
    %152 = arith.mulf %145, %145 : vector<16x32xf32>
    %cst_57 = arith.constant dense<0.000000e+00> : vector<16xf32>
    %153 = vector.multi_reduction <add>, %152, %cst_57 [1] : vector<16x32xf32> to vector<16xf32>
    %154 = vector.shape_cast %153 : vector<16xf32> to vector<16x1xf32>
    %cst_58 = arith.constant 3.200000e+01 : f32
    %155 = vector.broadcast %cst_58 : f32 to vector<16x1xf32>
    %156 = arith.divf %154, %155 : vector<16x1xf32>
    %157 = arith.mulf %151, %151 : vector<16x1xf32>
    %158 = arith.subf %156, %157 : vector<16x1xf32>
    %159 = vector.broadcast %151 : vector<16x1xf32> to vector<16x32xf32>
    %160 = arith.subf %145, %159 : vector<16x32xf32>
    %cst_59 = arith.constant 9.99999974E-6 : f32
    %161 = vector.broadcast %cst_59 : f32 to vector<16x1xf32>
    %162 = arith.addf %158, %161 : vector<16x1xf32>
    %163 = math.rsqrt %162 : vector<16x1xf32>
    %164 = vector.broadcast %163 : vector<16x1xf32> to vector<16x32xf32>
    %165 = arith.mulf %160, %164 : vector<16x32xf32>
    %166 = vector.broadcast %146 : vector<1x32xf32> to vector<16x32xf32>
    %167 = arith.mulf %165, %166 : vector<16x32xf32>
    %168 = vector.broadcast %147 : vector<1x32xf32> to vector<16x32xf32>
    %169 = arith.addf %167, %168 : vector<16x32xf32>
    %170 = vector.shape_cast %169 : vector<16x32xf32> to vector<2x8x32xf32>
    %c0_60 = arith.constant 0 : index
    %c0_61 = arith.constant 0 : index
    %c0_62 = arith.constant 0 : index
    %171 = vector.load %arg19[%c0_60, %c0_61, %c0_62] : memref<2x8x32xf32, #tpu.memory_space<vmem>>, vector<2x8x32xf32>
    tpu.vector_store %arg19[%c0_60, %c0_61, %c0_62], %170 {strides = array<i32>} : memref<2x8x32xf32, #tpu.memory_space<vmem>>, vector<2x8x32xf32>,
    return
  }
}

</mosaic_0001>

<bundles_post_ra>
// kernel: tpu_custom_call.1
= control target key start
LH: loop header
LB: loop body
LE: loop exit
PB: predicated region body
PF: predicated region fallthrough
CT: control target
= control target key end

     0   :  { %s1704_s0 = inlined_call_operand.hbm [shape: f32[2,8,32], index: 0, kind: input, shape index: {}]   ;;  %s1705_s1 = inlined_call_operand.hbm [shape: f32[2,8,32], index: 1, kind: input, shape index: {}]   ;;  %s1706_s2 = inlined_call_operand.hbm [shape: f32[2,8,32], index: 2, kind: input, shape index: {}]   ;;  %s1707_s3 = inlined_call_operand.vmem [shape: f32[32,32], index: 3, kind: input, shape index: {}]   ;;  %s1708_s4 = inlined_call_operand.vmem [shape: f32[1,32], index: 4, kind: input, shape index: {}]   ;;  %s1709_s5 = inlined_call_operand.vmem [shape: f32[32,32], index: 5, kind: input, shape index: {}]   ;;  %s1710_s6 = inlined_call_operand.vmem [shape: f32[1,32], index: 6, kind: input, shape index: {}]   ;;  %s1711_s7 = inlined_call_operand.vmem [shape: f32[32,32], index: 7, kind: input, shape index: {}]   ;;  %s1712_s8 = inlined_call_operand.vmem [shape: f32[1,32], index: 8, kind: input, shape index: {}]   ;;  %s1713_s9 = inlined_call_operand.hbm [shape: f32[32,32], index: 9, kind: input, shape index: {}]   ;;  %s1714_s10 = inlined_call_operand.vmem [shape: f32[1,32], index: 10, kind: input, shape index: {}]   ;;  %s1715_s11 = inlined_call_operand.vmem [shape: f32[1,32], index: 11, kind: input, shape index: {}]   ;;  %s1716_s12 = inlined_call_operand.vmem [shape: f32[1,32], index: 12, kind: input, shape index: {}]   ;;  %s1717_s13 = inlined_call_operand.hbm [shape: f32[32,64], index: 13, kind: input, shape index: {}]   ;;  %s1718_s14 = inlined_call_operand.vmem [shape: f32[1,64], index: 14, kind: input, shape index: {}]   ;;  %s1719_s15 = inlined_call_operand.vmem [shape: f32[64,32], index: 15, kind: input, shape index: {}]   ;;  %s1720_s16 = inlined_call_operand.vmem [shape: f32[1,32], index: 16, kind: input, shape index: {}]   ;;  %s1721_s17 = inlined_call_operand.vmem [shape: f32[1,32], index: 17, kind: input, shape index: {}]   ;;  %s1722_s18 = inlined_call_operand.vmem [shape: f32[1,32], index: 18, kind: input, shape index: {}]   ;;  %s1723_s19 = inlined_call_operand.hbm [shape: f32[2,8,32], index: 19, kind: output, shape index: {}]  }
   0x1   :  { %1725 = sst [smem:[#allocation16_spill]] %s1704_s0 }
   0x2   :  { %1726 = sst [smem:[#allocation17_spill]] %s1705_s1 }
   0x3   :  { %1727 = sst [smem:[#allocation18_spill]] %s1706_s2 }
   0x4   :  { %1728 = sst [smem:[#allocation19_spill]] %s1707_s3 }
   0x5   :  { %1729 = sst [smem:[#allocation20_spill]] %s1723_s19 }
   0x6   :  { %24 = vsyncpa [#allocation3], 0 }
   0x7   :  { %25 = vsyncpa [#allocation6], 0 }
   0x8   :  { %26 = vsyncpa [#allocation9], 0 }
   0x9   :  { %27 = vsyncpa [#allocation4], 0  ;;  %s1730_s20 = sld [smem:[#allocation17_spill]]  ;;  %s1330_s1 = smov [#allocation5]  }
   0xa   :  { %s47_s22 = sshll.u32 %s1330_s1, 4  ;;  %s83_s24 = sshll.u32 %s1713_s9, 4  ;;  %s48_s22 = int_to_ptr.vmem [resolvable:$true] %s47_s22  ;;  %s84_s24 = int_to_ptr.hbm [resolvable:$true] %s83_s24 }
   0xb   :  { %s1331_s25 = smov 128   ;;  %s1332_s3 = smov 8  }
   0xc   :  { %s1333_s26 = smov [#allocation8]   ;;  %s1731_s0 = sld [smem:[#allocation16_spill]] }
   0xd   :  { %s85_s27 = sshll.u32 %s1333_s26, 4  ;;  %s1732_s1 = sld [smem:[#allocation18_spill]]  ;;  %s86_s27 = int_to_ptr.vmem [resolvable:$true] %s85_s27 }
   0xe   :  { %91 = dma.hbm_to_vmem [thread:$0]  %s84_s24, 512, %s86_s27, [#allocation9], %s1331_s25, %s1331_s25, %s1332_s3  }
   0xf   :  { %s45_s21 = sshll.u32 %s1730_s20, 4  ;;  %s1334_s23 = smov [#allocation2]   ;;  %s46_s21 = int_to_ptr.hbm [resolvable:$true] %s45_s21 }
  0x10   :  { %53 = dma.hbm_to_vmem [thread:$0]  %s46_s21, 256, %s48_s22, [#allocation6], %s1331_s25, %s1331_s25, %s1332_s3  }
  0x11   :  { %s34_s19 = sshll.u32 %s1334_s23, 4  ;;  %s1335_s21 = smov [#allocation7]   ;;  %s35_s19 = int_to_ptr.vmem [resolvable:$true] %s34_s19 }
  0x12   :  { %s32_s30 = sshll.u32 %s1731_s0, 4  ;;  %s60_s22 = sshll.u32 %s1335_s21, 4  ;;  %s33_s30 = int_to_ptr.hbm [resolvable:$true] %s32_s30  ;;  %s61_s22 = int_to_ptr.vmem [resolvable:$true] %s60_s22 }
  0x13   :  { %s58_s2 = sshll.u32 %s1732_s1, 4  ;;  %s102_s29 = sshll.u32 %s1717_s13, 4  ;;  %s59_s2 = int_to_ptr.hbm [resolvable:$true] %s58_s2  ;;  %s103_s29 = int_to_ptr.hbm [resolvable:$true] %s102_s29 }
  0x14   :  { %40 = dma.hbm_to_vmem [thread:$0]  %s33_s30, 256, %s35_s19, [#allocation3], %s1331_s25, %s1331_s25, %s1332_s3  }
  0x15   :  { %66 = dma.hbm_to_vmem [thread:$0]  %s59_s2, 256, %s61_s22, [#allocation6], %s1331_s25, %s1331_s25, %s1332_s3  }
  0x16   :  { %s1336_s24 = smov [#allocation10]  }
  0x17   :  { %s104_s27 = sshll.u32 %s1336_s24, 4  ;;  %s105_s27 = int_to_ptr.vmem [resolvable:$true] %s104_s27 }
  0x18   :  { %110 = dma.hbm_to_vmem [thread:$0]  %s103_s29, 512, %s105_s27, [#allocation9], %s1331_s25, %s1331_s25, %s1332_s3  }
  0x19   :  { %1322 = dma.done.wait [#allocation3], 256  }
  0x1a   :  { %1323 = vsyncadd [#allocation3], 4294967040 }
  0x1b   :  { %1324 = dma.done.wait [#allocation6], 512  }
  0x1c   :  { %1325 = vsyncadd [#allocation6], 4294966784 }
  0x1d   :  { %1326 = dma.done.wait [#allocation9], 1024  }
  0x1e   :  { %1327 = vsyncadd [#allocation9], 4294966272  ;;  %v188_v0 = vld [vmem:[%s1709_s5 + $0x18] sm:$0xff]  ;;  %v187_v1 = vld [vmem:[%s1709_s5 + $0x10] sm:$0xff]  ;;  %s1733_s1 = sld [smem:[#allocation19_spill]]  ;;  %vm155_vm0 = vcmask 261120  }
  0x1f   :  { %211 = vmatpush.msra.mxu1 %v188_v0  ;;  %v186_v4 = vld [vmem:[%s1709_s5 + $0x8] sm:$0xff]  ;;  %v185_v6 = vld [vmem:[%s1709_s5] sm:$0xff]  ;;  %v143_v7 = vld [vmem:[#allocation5] sm:$0xff]  ;;  %vm307_vm1 = vcmask 64512   ;;  %s1337_s9 = smov 112   ;;  %s1338_s20 = smov 120  }
  0x20   :  { %v1498_v9 = vld [vmem:[#allocation2] sm:$0xff]  ;;  %v144_v10 = vld [vmem:[#allocation5 + $0x8] sm:$0xff]  ;;  %v1503_v11 = vld [vmem:[#allocation2 + $0x8] sm:$0xff]  ;;  %s1341_s24 = smov 16   ;;  %vm785_vm2 = vcmask 130048   ;;  %vm787_vm3 = vcmask 195584  }
  0x21   :  { %212 = vmatpush.msra.mxu1 %v187_v1  ;;  %v1126_v12 = vld [vmem:[%s1710_s6] ss:$0 sm:$0xff]  ;;  %v225_v22 = vld [vmem:[%s1711_s7 + $0x18] sm:$0xff]  ;;  %v224_v23 = vld [vmem:[%s1711_s7 + $0x10] sm:$0xff]  ;;  %vm961_vm11 = vcmask 523264   ;;  %s1734_s0 = sld [smem:[#allocation20_spill]] }
  0x22   :  { %v1127_v13 = vld [vmem:[%s1708_s4] ss:$0 sm:$0xff]  ;;  %s1339_s4 = smov 104   ;;  %248 = vmatpush.msra.mxu2 %v225_v22  ;;  %v223_v24 = vld [vmem:[%s1711_s7 + $0x8] sm:$0xff] }
  0x23   :  { %213 = vmatpush.msra.mxu1 %v186_v4  ;;  %v222_v25 = vld [vmem:[%s1711_s7] sm:$0xff]  ;;  %v146_v27 = vld [vmem:[#allocation7 + $0x8] sm:$0xff] }
  0x24   :  { %v150_v2 = vld [vmem:[%s1733_s1 + $0x18] sm:$0xff]  ;;  %v149_v3 = vld [vmem:[%s1733_s1 + $0x10] sm:$0xff]  ;;  %v148_v5 = vld [vmem:[%s1733_s1 + $0x8] sm:$0xff]  ;;  %249 = vmatpush.msra.mxu2 %v224_v23 }
  0x25   :  { %174 = vmatpush.msra.mxu0 %v150_v2  ;;  %v147_v8 = vld [vmem:[%s1733_s1] sm:$0xff]  ;;  %214 = vmatpush.msra.mxu1 %v185_v6 }
  0x26   :  { %1078 = vmatmul.msk.f32.vlgmr.msra.gmra.mxu1 %vm155_vm0, %v143_v7  ;;  %250 = vmatpush.msra.mxu2 %v223_v24  ;;  %v145_v26 = vld [vmem:[#allocation7] sm:$0xff] }
  0x27   :  { %175 = vmatpush.msra.mxu0 %v149_v3  ;;  %v1128_v45 = vld [vmem:[%s1712_s8] ss:$0 sm:$0xff]  ;;  %s1340_s8 = smov 24   ;;  %s1061_s30 = sshll.u32 %s1734_s0, 4  ;;  %s1062_s30 = int_to_ptr.hbm [resolvable:$true] %s1061_s30 }
  0x28   :  { %251 = vmatpush.msra.mxu2 %v222_v25 }
  0x29   :  { %176 = vmatpush.msra.mxu0 %v148_v5  ;;  %1080 = vmatmul.msk.f32.vlgmr.msra.gmra.mxu2 %vm155_vm0, %v145_v26 }
  0x2b   :  { %177 = vmatpush.msra.mxu0 %v147_v8 }
  0x2c   :  { %1076 = vmatmul.msk.f32.vlgmr.msra.gmra.mxu0 %vm155_vm0, %v1498_v9 }
  0x2e   :  { %1079 = vmatmul.msk.f32.gmra.mxu1 %vm155_vm0, %v144_v10 }
  0x31   :  { %1081 = vmatmul.msk.f32.gmra.mxu2 %vm155_vm0, %v146_v27 }
  0x34   :  { %1077 = vmatmul.msk.f32.gmra.mxu0 %vm155_vm0, %v1503_v11 }
  0xa3   :  { %v216_v14 = vpop.f32.mrf.mxu1 }
  0xa4   :  { %v217_v16 = vadd.f32 %v1126_v12, %v216_v14 }
  0xa6   :  { %276 = vrot.lane.b32.xlu1 %v217_v16, %s1337_s9  ;;  %274 = vrot.lane.b32.xlu0 %v217_v16, %s1338_s20 }
  0xa7   :  { %1082 = vmatpush.xpose.msk.msrb.mxu0 %vm307_vm1, %v217_v16 }
  0xa9   :  { %v179_v15 = vpop.f32.mrf.mxu0 }
  0xaa   :  { %v180_v17 = vadd.f32 %v1127_v13, %v179_v15 }
  0xab   :  { %v219_v18 = vpop.f32.mrf.mxu1 }
  0xac   :  { %1083 = vmatmul.msk.f32.vlgmr.msrb.gmra.mxu0 %vm307_vm1, %v180_v17  ;;  %v220_v20 = vadd.f32 %v1126_v12, %v219_v18  ;;  %v253_v44 = vpop.f32.mrf.mxu2 }
  0xad   :  { %v1567_v46 = vadd.f32 %v1128_v45, %v253_v44 }
  0xae   :  { %281 = vrot.lane.b32.xlu2 %v220_v20, %s1338_s20  ;;  %1090 = vmatpush.xpose.msk.msrb.mxu1 %vm307_vm1, %v220_v20 }
  0xaf   :  { %262 = vrot.lane.b32.xlu1 %v180_v17, %s1337_s9  ;;  %260 = vrot.lane.b32.xlu0 %v180_v17, %s1338_s20 }
  0xb1   :  { %v182_v19 = vpop.f32.mrf.mxu0 }
  0xb2   :  { %v183_v21 = vadd.f32 %v1127_v13, %v182_v19  ;;  %606 = vmatpush.msra.mxu1 %v1567_v46 }
  0xb4   :  { %1091 = vmatmul.msk.f32.vlgmr.msrb.gmra.mxu1 %vm307_vm1, %v183_v21  ;;  %v256_v47 = vpop.f32.mrf.mxu2 }
  0xb5   :  { %v1570_v48 = vadd.f32 %v1128_v45, %v256_v47 }
  0xb6   :  { %283 = vrot.lane.b32.xlu2 %v220_v20, %s1337_s9 }
  0xb7   :  { %269 = vrot.lane.b32.xlu1 %v183_v21, %s1337_s9  ;;  %267 = vrot.lane.b32.xlu0 %v183_v21, %s1338_s20 }
  0xb8   :  { %698 = vmatpush.msrb.mxu1 %v1570_v48 }
  0xbe   :  { %278 = vrot.lane.b32.xlu2 %v217_v16, %s1339_s4 }
  0xbf   :  { %264 = vrot.lane.b32.xlu0 %v180_v17, %s1339_s4  ;;  %285 = vrot.lane.b32.xlu1 %v220_v20, %s1339_s4 }
  0xc6   :  { %271 = vrot.lane.b32.xlu2 %v183_v21, %s1339_s4 }
 0x108   :  { %v282_v28 = vpop.permute.xlu2 %281 }
 0x109   :  { %1092 = vmatpush.xpose.msk.msrb.mxu2 %vm307_vm1, %v282_v28 }
 0x110   :  { %v284_v29 = vpop.permute.xlu2 %283 }
 0x118   :  { %v279_v30 = vpop.permute.xlu2 %278  ;;  %v277_v31 = vpop.permute.xlu1 %276 }
 0x119   :  { %v275_v32 = vpop.permute.xlu0 %274  ;;  %1088 = vmatpush.xpose.msk.msra.mxu0 %vm307_vm1, %v279_v30 }
 0x11a   :  { %1084 = vmatpush.xpose.msk.msra.mxu3 %vm307_vm1, %v275_v32 }
 0x11e   :  { %1086 = vmatpush.xpose.msk.msrb.mxu3 %vm307_vm1, %v277_v31 }
 0x120   :  { %v272_v43 = vpop.permute.xlu2 %271 }
 0x121   :  { %v263_v33 = vpop.permute.xlu1 %262  ;;  %v261_v34 = vpop.permute.xlu0 %260 }
 0x122   :  { %1085 = vmatmul.msk.f32.vlgmr.msra.gmra.mxu3 %vm307_vm1, %v261_v34 }
 0x123   :  { %1094 = vmatpush.xpose.msk.msra.mxu3 %vm307_vm1, %v284_v29 }
 0x129   :  { %v1550_v35 = vpop.f32.mrf.mxu0  ;;  %v270_v37 = vpop.permute.xlu1 %269 }
 0x12a   :  { %v500_v36 = vsel %vm307_vm1, %v1550_v35, -inf  ;;  %v268_v38 = vpop.permute.xlu0 %267  ;;  %1087 = vmatmul.msk.f32.vlgmr.msrb.gmra.mxu3 %vm307_vm1, %v263_v33 }
 0x12b   :  { %501 = vmax.xlane.f32.xlu2 %v500_v36  ;;  %1093 = vmatmul.msk.f32.vlgmr.msrb.gmra.mxu2 %vm307_vm1, %v268_v38 }
 0x131   :  { %v1556_v39 = vpop.f32.mrf.mxu1  ;;  %v286_v42 = vpop.permute.xlu1 %285 }
 0x132   :  { %v512_v40 = vsel %vm307_vm1, %v1556_v39, -inf  ;;  %v265_v41 = vpop.permute.xlu0 %264  ;;  %1095 = vmatmul.msk.f32.vlgmr.msra.gmra.mxu3 %vm307_vm1, %v270_v37  ;;  %1096 = vmatpush.xpose.msk.msrb.mxu0 %vm307_vm1, %v286_v42 }
 0x133   :  { %513 = vmax.xlane.f32.xlu1 %v512_v40  ;;  %1089 = vmatmul.msk.f32.vlgmr.msra.gmra.mxu0 %vm307_vm1, %v265_v41 }
 0x13b   :  { %1097 = vmatmul.msk.f32.vlgmr.msrb.gmra.mxu0 %vm307_vm1, %v272_v43 }
 0x19e   :  { %v502_v61 = vpop.xlane.xlu2 %501 }
 0x19f   :  { %v524_v33 = vsub.f32 %v1550_v35, %v502_v61 }
 0x1a1   :  { %v532_v34 = vmul.f32 1.442695, %v524_v33 }
 0x1a5   :  { %v353_v49 = vpop.f32.mrf.mxu3 }
 0x1a6   :  { %v503_v50 = vsel %vm307_vm1, %v353_v49, -inf  ;;  %v514_v62 = vpop.xlane.xlu1 %513 }
 0x1a7   :  { %504 = vmax.xlane.f32.xlu0 %v503_v50  ;;  %v528_v36 = vsub.f32 %v1556_v39, %v514_v62 }
 0x1a9   :  { %v540_v38 = vmul.f32 1.442695, %v528_v36 }
 0x1ad   :  { %v377_v51 = vpop.f32.mrf.mxu3 }
 0x1ae   :  { %v449_v54 = vpop.f32.mrf.mxu2  ;;  %v506_v60 = vsel %vm307_vm1, %v377_v51, -inf }
 0x1af   :  { %v515_v58 = vsel %vm307_vm1, %v449_v54, -inf }
 0x1b0   :  { %v401_v52 = vpop.f32.mrf.mxu0 }
 0x1b1   :  { %v509_v53 = vsel %vm307_vm1, %v401_v52, -inf }
 0x1b2   :  { %510 = vmax.xlane.f32.xlu2 %v509_v53 }
 0x1b5   :  { %v473_v55 = vpop.f32.mrf.mxu3 }
 0x1b6   :  { %v518_v56 = vsel %vm307_vm1, %v473_v55, -inf }
 0x1b7   :  { %519 = vmax.xlane.f32.xlu0 %v518_v56 }
 0x1b8   :  { %v497_v57 = vpop.f32.mrf.mxu0 }
 0x1b9   :  { %v521_v59 = vsel %vm307_vm1, %v497_v57, -inf }
 0x1ba   :  { %516 = vmax.xlane.f32.xlu2 %v515_v58  ;;  %522 = vmax.xlane.f32.xlu1 %v521_v59 }
 0x1c2   :  { %507 = vmax.xlane.f32.xlu1 %v506_v60 }
 0x1d2   :  { %288 = vrot.lane.b32.xlu2 %v1567_v46, %s1338_s20 }
 0x1db   :  { %291 = vrot.lane.b32.xlu1 %v1567_v46, %s1337_s9 }
 0x21a   :  { %v505_v63 = vpop.xlane.xlu0 %504 }
 0x21b   :  { %v525_v2 = vsub.f32 %v353_v49, %v505_v63 }
 0x21d   :  { %v534_v4 = vmul.f32 1.442695, %v525_v2 }
 0x225   :  { %v511_v0 = vpop.xlane.xlu2 %510 }
 0x226   :  { %v527_v1 = vsub.f32 %v401_v52, %v511_v0 }
 0x228   :  { %v538_v3 = vmul.f32 1.442695, %v527_v1 }
 0x22a   :  { %1136 = vpow2.f32 %v538_v3  ;;  %v520_v14 = vpop.xlane.xlu0 %519 }
 0x22b   :  { %1138 = vpow2.f32 %v534_v4  ;;  %v530_v21 = vsub.f32 %v473_v55, %v520_v14  ;;  %v806_v14 = vld [vmem:[#allocation8 + $0x10] sm:$0xff] }
 0x22d   :  { %v517_v5 = vpop.xlane.xlu2 %516  ;;  %v523_v6 = vpop.xlane.xlu1 %522  ;;  %v544_v25 = vmul.f32 1.442695, %v530_v21 }
 0x22e   :  { %v529_v7 = vsub.f32 %v449_v54, %v517_v5  ;;  %v531_v12 = vsub.f32 %v497_v57, %v523_v6 }
 0x230   :  { %v1583_v8 = vpop.eup %1136  ;;  %v542_v10 = vmul.f32 1.442695, %v529_v7  ;;  %v546_v15 = vmul.f32 1.442695, %v531_v12 }
 0x231   :  { %v557_v13 = vsel %vm307_vm1, %v1583_v8, 0.0  ;;  %v1139_v18 = vpop.eup %1138 }
 0x232   :  { %1140 = vpow2.f32 %v542_v10  ;;  %558 = vadd.xlane.f32.xlu0 %v557_v13  ;;  %v551_v23 = vsel %vm307_vm1, %v1139_v18, 0.0  ;;  %v807_v13 = vld [vmem:[#allocation8 + $0x18] sm:$0xff] }
 0x233   :  { %1142 = vpow2.f32 %v546_v15  ;;  %v805_v15 = vld [vmem:[#allocation8 + $0x8] sm:$0xff] }
 0x235   :  { %v289_v16 = vpop.permute.xlu2 %288  ;;  %v508_v17 = vpop.xlane.xlu1 %507 }
 0x236   :  { %v526_v19 = vsub.f32 %v377_v51, %v508_v17  ;;  %629 = vmatpush.msra.mxu2 %v289_v16  ;;  %v804_v16 = vld [vmem:[#allocation8] sm:$0xff] }
 0x238   :  { %v1141_v20 = vpop.eup %1140  ;;  %v536_v22 = vmul.f32 1.442695, %v526_v19 }
 0x239   :  { %v563_v24 = vsel %vm307_vm1, %v1141_v20, 0.0  ;;  %v1589_v26 = vpop.eup %1142 }
 0x23a   :  { %1144 = vpow2.f32 %v536_v22  ;;  %552 = vadd.xlane.f32.xlu0 %v551_v23  ;;  %564 = vadd.xlane.f32.xlu1 %v563_v24  ;;  %v569_v28 = vsel %vm307_vm1, %v1589_v26, 0.0 }
 0x23b   :  { %1146 = vpow2.f32 %v544_v25 }
 0x23c   :  { %1148 = vpow2.f32 %v532_v34 }
 0x23d   :  { %1150 = vpow2.f32 %v540_v38 }
 0x240   :  { %v1145_v27 = vpop.eup %1144 }
 0x241   :  { %v554_v29 = vsel %vm307_vm1, %v1145_v27, 0.0  ;;  %v1147_v30 = vpop.eup %1146 }
 0x242   :  { %570 = vadd.xlane.f32.xlu0 %v569_v28  ;;  %555 = vadd.xlane.f32.xlu2 %v554_v29  ;;  %v566_v31 = vsel %vm307_vm1, %v1147_v30, 0.0  ;;  %v1149_v37 = vpop.eup %1148 }
 0x243   :  { %v548_v40 = vsel %vm307_vm1, %v1149_v37, 0.0  ;;  %v1151_v41 = vpop.eup %1150 }
 0x244   :  { %v560_v42 = vsel %vm307_vm1, %v1151_v41, 0.0 }
 0x24a   :  { %567 = vadd.xlane.f32.xlu0 %v566_v31  ;;  %v1129_v31 = vld [vmem:[%s1714_s10] ss:$0 sm:$0xff] }
 0x24d   :  { %v292_v32 = vpop.permute.xlu1 %291 }
 0x24e   :  { %652 = vmatpush.msrb.mxu3 %v292_v32 }
 0x253   :  { %301 = vrot.lane.b32.xlu1 %v1570_v48, %s1337_s9 }
 0x25a   :  { %298 = vrot.lane.b32.xlu2 %v1570_v48, %s1338_s20 }
 0x25e   :  { %294 = vrot.lane.b32.xlu0 %v1567_v46, %s1339_s4 }
 0x262   :  { %304 = vrot.lane.b32.xlu2 %v1570_v48, %s1339_s4 }
 0x27d   :  { %549 = vadd.xlane.f32.xlu1 %v548_v40 }
 0x288   :  { %561 = vadd.xlane.f32.xlu0 %v560_v42 }
 0x2a5   :  { %v559_v43 = vpop.xlane.xlu0 %558 }
 0x2ad   :  { %v553_v44 = vpop.xlane.xlu0 %552  ;;  %v565_v45 = vpop.xlane.xlu1 %564 }
 0x2ae   :  { %1152 = vrcp.f32 %v553_v44 }
 0x2af   :  { %1154 = vrcp.f32 %v565_v45  ;;  %v1342_v45 = vmov 32.0  }
 0x2b4   :  { %v1153_v46 = vpop.eup %1152 }
 0x2b5   :  { %v581_v35 = vmul.f32 %v1153_v46, %v1139_v18  ;;  %v571_v47 = vpop.xlane.xlu0 %570  ;;  %v556_v48 = vpop.xlane.xlu2 %555 }
 0x2b6   :  { %1156 = vrcp.f32 %v556_v48  ;;  %v1155_v39 = vpop.eup %1154 }
 0x2b7   :  { %1099 = vmatmul.msk.f32.vlgmr.msra.gmra.mxu2 %vm307_vm1, %v581_v35  ;;  %v585_v50 = vmul.f32 %v1155_v39, %v1141_v20 }
 0x2bc   :  { %v1157_v49 = vpop.eup %1156 }
 0x2bd   :  { %v568_v51 = vpop.xlane.xlu0 %567  ;;  %v299_v52 = vpop.permute.xlu2 %298  ;;  %v582_v53 = vmul.f32 %v1157_v49, %v1145_v27  ;;  %v913_v49 = vld [vmem:[#allocation10 + $0x18] sm:$0xff] }
 0x2be   :  { %1158 = vrcp.f32 %v568_v51  ;;  %721 = vmatpush.msrb.mxu2 %v299_v52  ;;  %v911_v51 = vld [vmem:[#allocation10 + $0x8] sm:$0xff] }
 0x2bf   :  { %1103 = vmatmul.msk.f32.vlgmr.msrb.gmra.mxu2 %vm307_vm1, %v585_v50  ;;  %1100 = vmatmul.msk.f32.vlgmr.msrb.gmra.mxu3 %vm307_vm1, %v582_v53  ;;  %1160 = vrcp.f32 %v559_v43  ;;  %v910_v53 = vld [vmem:[#allocation10] sm:$0xff] }
 0x2c0   :  { %1162 = vrcp.f32 %v571_v47  ;;  %936 = vmatpush.msra.mxu2 %v913_v49 }
 0x2c4   :  { %v1159_v54 = vpop.eup %1158 }
 0x2c5   :  { %v586_v55 = vmul.f32 %v1159_v54, %v1147_v30  ;;  %v302_v56 = vpop.permute.xlu1 %301  ;;  %v1161_v57 = vpop.eup %1160 }
 0x2c6   :  { %744 = vmatpush.msra.mxu3 %v302_v56  ;;  %v583_v58 = vmul.f32 %v1161_v57, %v1583_v8  ;;  %v305_v60 = vpop.permute.xlu2 %304  ;;  %v1163_v61 = vpop.eup %1162 }
 0x2c7   :  { %1104 = vmatmul.msk.f32.vlgmr.msra.gmra.mxu3 %vm307_vm1, %v586_v55  ;;  %v587_v62 = vmul.f32 %v1163_v61, %v1589_v26 }
 0x2d0   :  { %v295_v59 = vpop.permute.xlu0 %294 }
 0x2d1   :  { %675 = vmatpush.msra.mxu0 %v295_v59 }
 0x2d2   :  { %1101 = vmatmul.msk.f32.vlgmr.msra.gmra.mxu0 %vm307_vm1, %v583_v58 }
 0x2d3   :  { %767 = vmatpush.msrb.mxu0 %v305_v60 }
 0x2da   :  { %1105 = vmatmul.msk.f32.vlgmr.msrb.gmra.mxu0 %vm307_vm1, %v587_v62 }
 0x2f0   :  { %v550_v63 = vpop.xlane.xlu1 %549 }
 0x2f1   :  { %1164 = vrcp.f32 %v550_v63 }
 0x2f7   :  { %v1165_v0 = vpop.eup %1164 }
 0x2f8   :  { %v580_v1 = vmul.f32 %v1165_v0, %v1149_v37 }
 0x2fa   :  { %1098 = vmatmul.msk.f32.vlgmr.msra.gmra.mxu1 %vm307_vm1, %v580_v1 }
 0x2fb   :  { %v562_v2 = vpop.xlane.xlu0 %561  ;;  %830 = vmatpush.msra.mxu1 %v807_v13  ;;  %v954_v13 = vld [vmem:[%s1719_s15 + $0x28] sm:$0xff] }
 0x2fc   :  { %1166 = vrcp.f32 %v562_v2 }
 0x2fd   :  { %831 = vmatpush.msra.mxu1 %v806_v14  ;;  %1168 = vrcp.f32 %v1342_v45  ;;  %v1133_v45 = vld [vmem:[%s1720_s16] ss:$0 sm:$0xff] }
 0x2ff   :  { %832 = vmatpush.msra.mxu1 %v805_v15 }
 0x301   :  { %833 = vmatpush.msra.mxu1 %v804_v16 }
 0x302   :  { %v1167_v3 = vpop.eup %1166 }
 0x303   :  { %v584_v4 = vmul.f32 %v1167_v3, %v1151_v41  ;;  %v1169_v46 = vpop.eup %1168  ;;  %v956_v3 = vld [vmem:[%s1719_s15 + $0x38] sm:$0xff] }
 0x304   :  { %v852_v35 = vmul.f32 32.0, %v1169_v46  ;;  %vm856_vm4 = vweird.f32 %v1169_v46  ;;  %976 = vmatpush.msrb.mxu3 %v956_v3 }
 0x305   :  { %1102 = vmatmul.msk.f32.vlgmr.msrb.gmra.mxu1 %vm307_vm1, %v584_v4  ;;  %v955_v4 = vld [vmem:[%s1719_s15 + $0x30] sm:$0xff] }
 0x306   :  { %v853_v47 = vsub.f32 1.0, %v852_v35  ;;  %977 = vmatpush.msrb.mxu3 %v955_v4 }
 0x308   :  { %v854_v48 = vmul.f32 %v1169_v46, %v853_v47  ;;  %978 = vmatpush.msrb.mxu3 %v954_v13  ;;  %v1135_v13 = vld [vmem:[%s1722_s18] ss:$0 sm:$0xff] }
 0x30a   :  { %v855_v39 = vadd.f32 %v1169_v46, %v854_v48 }
 0x30c   :  { %v1637_v50 = vsel %vm856_vm4, %v1169_v46, %v855_v39 }
 0x33a   :  { %v631_v6 = vpop.f32.mrf.mxu2 }
 0x342   :  { %v654_v8 = vpop.f32.mrf.mxu3  ;;  %v723_v10 = vpop.f32.mrf.mxu2 }
 0x34a   :  { %v746_v12 = vpop.f32.mrf.mxu3 }
 0x34f   :  { %v677_v5 = vpop.f32.mrf.mxu0 }
 0x350   :  { %781 = vrot.lane.b32.xlu2 %v677_v5, %s1340_s8 }
 0x357   :  { %v769_v7 = vpop.f32.mrf.mxu0 }
 0x358   :  { %773 = vrot.lane.b32.xlu2 %v631_v6, %s1332_s3  ;;  %798 = vrot.lane.b32.xlu1 %v769_v7, %s1340_s8 }
 0x360   :  { %777 = vrot.lane.b32.xlu2 %v654_v8, %s1341_s24  ;;  %v1130_v8 = vld [vmem:[%s1715_s11] ss:$0 sm:$0xff] }
 0x368   :  { %790 = vrot.lane.b32.xlu2 %v723_v10, %s1332_s3 }
 0x370   :  { %794 = vrot.lane.b32.xlu2 %v746_v12, %s1341_s24 }
 0x377   :  { %v608_v19 = vpop.f32.mrf.mxu1 }
 0x382   :  { %v700_v25 = vpop.f32.mrf.mxu1 }
 0x3aa   :  { %v782_v17 = vpop.permute.xlu2 %781 }
 0x3b2   :  { %v774_v18 = vpop.permute.xlu2 %773 }
 0x3b3   :  { %v784_v20 = vsel %vm307_vm1, %v608_v19, %v774_v18  ;;  %v953_v18 = vld [vmem:[%s1719_s15 + $0x20] sm:$0xff] }
 0x3b4   :  { %979 = vmatpush.msrb.mxu3 %v953_v18 }
 0x3ba   :  { %v778_v21 = vpop.permute.xlu2 %777 }
 0x3bb   :  { %v786_v22 = vsel %vm785_vm2, %v784_v20, %v778_v21  ;;  %v952_v21 = vld [vmem:[%s1719_s15 + $0x18] sm:$0xff] }
 0x3bc   :  { %v788_v23 = vsel %vm787_vm3, %v786_v22, %v782_v17  ;;  %v1131_v17 = vld [vmem:[%s1716_s12] ss:$0 sm:$0xff]  ;;  %980 = vmatpush.msrb.mxu3 %v952_v21 }
 0x3bd   :  { %1106 = vmatmul.msk.f32.vlgmr.msra.gmra.mxu1 %vm155_vm0, %v788_v23 }
 0x3c2   :  { %v791_v24 = vpop.permute.xlu2 %790 }
 0x3c3   :  { %v801_v26 = vsel %vm307_vm1, %v700_v25, %v791_v24 }
 0x3ca   :  { %v795_v27 = vpop.permute.xlu2 %794  ;;  %v799_v28 = vpop.permute.xlu1 %798 }
 0x3cb   :  { %v802_v29 = vsel %vm785_vm2, %v801_v26, %v795_v27 }
 0x3cc   :  { %v803_v30 = vsel %vm787_vm3, %v802_v29, %v799_v28 }
 0x3cd   :  { %1107 = vmatmul.msk.f32.gmra.mxu1 %vm155_vm0, %v803_v30 }
 0x43a   :  { %v835_v32 = vpop.f32.mrf.mxu1 }
 0x43b   :  { %v836_v33 = vadd.f32 %v1129_v31, %v835_v32 }
 0x43d   :  { %v841_v34 = vadd.f32 %v836_v33, %v1498_v9 }
 0x43f   :  { %v845_v36 = vsel %vm155_vm0, %v841_v34, 0.0  ;;  %v860_v37 = vmul.f32 %v841_v34, %v841_v34 }
 0x440   :  { %846 = vadd.xlane.f32.xlu0 %v845_v36  ;;  %v950_v36 = vld [vmem:[%s1719_s15 + $0x8] sm:$0xff] }
 0x441   :  { %v862_v38 = vsel %vm155_vm0, %v860_v37, 0.0  ;;  %v949_v37 = vld [vmem:[%s1719_s15] sm:$0xff] }
 0x442   :  { %863 = vadd.xlane.f32.xlu2 %v862_v38  ;;  %v1132_v38 = vld [vmem:[%s1718_s14] ss:$0 sm:$0xff] }
 0x44a   :  { %v838_v40 = vpop.f32.mrf.mxu1 }
 0x44b   :  { %v839_v41 = vadd.f32 %v1129_v31, %v838_v40 }
 0x44d   :  { %v1630_v42 = vadd.f32 %v839_v41, %v1503_v11  ;;  %v912_v11 = vld [vmem:[#allocation10 + $0x10] sm:$0xff] }
 0x44e   :  { %937 = vmatpush.msra.mxu2 %v912_v11 }
 0x44f   :  { %v848_v43 = vsel %vm155_vm0, %v1630_v42, 0.0  ;;  %v861_v44 = vmul.f32 %v1630_v42, %v1630_v42 }
 0x450   :  { %849 = vadd.xlane.f32.xlu0 %v848_v43  ;;  %938 = vmatpush.msra.mxu2 %v911_v51 }
 0x451   :  { %v865_v9 = vsel %vm155_vm0, %v861_v44, 0.0 }
 0x452   :  { %939 = vmatpush.msra.mxu2 %v910_v53 }
 0x458   :  { %866 = vadd.xlane.f32.xlu0 %v865_v9 }
 0x4b3   :  { %v847_v52 = vpop.xlane.xlu0 %846 }
 0x4b4   :  { %v858_v54 = vmul.f32 %v1637_v50, %v847_v52 }
 0x4b5   :  { %v864_v55 = vpop.xlane.xlu2 %863 }
 0x4b6   :  { %v870_v56 = vmul.f32 %v858_v54, %v858_v54  ;;  %v868_v57 = vmul.f32 %v864_v55, %v1637_v50  ;;  %v874_v7 = vsub.f32 %v841_v34, %v858_v54  ;;  %v951_v34 = vld [vmem:[%s1719_s15 + $0x10] sm:$0xff] }
 0x4b7   :  { %981 = vmatpush.msrb.mxu3 %v951_v34 }
 0x4b8   :  { %v872_v58 = vsub.f32 %v868_v57, %v870_v56 }
 0x4b9   :  { %982 = vmatpush.msrb.mxu3 %v950_v36 }
 0x4ba   :  { %v876_v59 = vadd.f32 1e-05, %v872_v58 }
 0x4bb   :  { %983 = vmatpush.msrb.mxu3 %v949_v37 }
 0x4bc   :  { %1170 = vrsqrt.f32 %v876_v59  ;;  %vm884_vm6 = vweird.f32 %v876_v59 }
 0x4c2   :  { %v1171_v60 = vpop.eup %1170 }
 0x4c3   :  { %v879_v61 = vmul.f32 %v1171_v60, %v876_v59  ;;  %v850_v62 = vpop.xlane.xlu0 %849  ;;  %vm885_vm5 = vweird.f32 %v1171_v60 }
 0x4c4   :  { %v859_v1 = vmul.f32 %v1637_v50, %v850_v62  ;;  %vm886_vm7 = vmor %vm884_vm6, %vm885_vm5 }
 0x4c5   :  { %v880_v63 = vmul.f32 %v1171_v60, %v879_v61 }
 0x4c6   :  { %v871_v10 = vmul.f32 %v859_v1, %v859_v1  ;;  %v875_v29 = vsub.f32 %v1630_v42, %v859_v1 }
 0x4c7   :  { %v881_v0 = vmul.f32 0.5, %v880_v63 }
 0x4c9   :  { %v882_v2 = vsub.f32 1.5, %v881_v0 }
 0x4cb   :  { %v883_v5 = vmul.f32 %v1171_v60, %v882_v2  ;;  %v867_v6 = vpop.xlane.xlu0 %866 }
 0x4cc   :  { %v869_v12 = vmul.f32 %v867_v6, %v1637_v50 }
 0x4cd   :  { %v887_v14 = vsel %vm886_vm7, %v1171_v60, %v883_v5 }
 0x4ce   :  { %v898_v15 = vmul.f32 %v887_v14, %v874_v7  ;;  %v873_v16 = vsub.f32 %v869_v12, %v871_v10  ;;  %v1134_v7 = vld [vmem:[%s1721_s17] ss:$0 sm:$0xff]  ;;  %s1343_s17 = smov [#allocation11]  }
 0x4cf   :  { %s1059_s18 = sshll.u32 %s1343_s17, 4  ;;  %s1060_s18 = int_to_ptr.vmem [resolvable:$true] %s1059_s18 }
 0x4d0   :  { %v903_v19 = vmul.f32 %v1130_v8, %v898_v15  ;;  %v877_v20 = vadd.f32 1e-05, %v873_v16 }
 0x4d2   :  { %1172 = vrsqrt.f32 %v877_v20  ;;  %v908_v22 = vadd.f32 %v1131_v17, %v903_v19  ;;  %vm894_vm9 = vweird.f32 %v877_v20 }
 0x4d4   :  { %1108 = vmatmul.msk.f32.vlgmr.msra.gmra.mxu2 %vm155_vm0, %v908_v22 }
 0x4d8   :  { %v1173_v23 = vpop.eup %1172 }
 0x4d9   :  { %v889_v24 = vmul.f32 %v1173_v23, %v877_v20  ;;  %vm895_vm8 = vweird.f32 %v1173_v23 }
 0x4da   :  { %vm896_vm10 = vmor %vm894_vm9, %vm895_vm8 }
 0x4db   :  { %v890_v25 = vmul.f32 %v1173_v23, %v889_v24 }
 0x4dd   :  { %v891_v26 = vmul.f32 0.5, %v890_v25 }
 0x4df   :  { %v892_v27 = vsub.f32 1.5, %v891_v26 }
 0x4e1   :  { %v893_v28 = vmul.f32 %v1173_v23, %v892_v27 }
 0x4e3   :  { %v897_v30 = vsel %vm896_vm10, %v1173_v23, %v893_v28 }
 0x4e4   :  { %v899_v31 = vmul.f32 %v897_v30, %v875_v29 }
 0x4e6   :  { %v904_v32 = vmul.f32 %v1130_v8, %v899_v31 }
 0x4e8   :  { %v909_v33 = vadd.f32 %v1131_v17, %v904_v32 }
 0x4ea   :  { %1109 = vmatmul.msk.f32.gmra.mxu2 %vm155_vm0, %v909_v33 }
 0x557   :  { %v941_v40 = vpop.f32.mrf.mxu2 }
 0x558   :  { %v942_v41 = vadd.f32 %v1132_v38, %v941_v40 }
 0x55a   :  { %v947_v42 = vmax.f32 %v942_v41, 0.0 }
 0x55c   :  { %1110 = vmatmul.msk.f32.vlgmr.msrb.gmra.mxu3 %vm961_vm11, %v947_v42 }
 0x56d   :  { %v944_v43 = vpop.f32.mrf.mxu2 }
 0x56e   :  { %v945_v44 = vadd.f32 %v1132_v38, %v944_v43 }
 0x570   :  { %v948_v9 = vmax.f32 %v945_v44, 0.0 }
 0x572   :  { %1111 = vmatmul.msk.f32.gmra.mxu3 %vm961_vm11, %v948_v9 }
 0x5df   :  { %v985_v46 = vpop.f32.mrf.mxu3 }
 0x5e0   :  { %v986_v35 = vadd.f32 %v1133_v45, %v985_v46 }
 0x5e2   :  { %v991_v47 = vadd.f32 %v986_v35, %v908_v22 }
 0x5e4   :  { %v995_v48 = vsel %vm155_vm0, %v991_v47, 0.0  ;;  %v1003_v39 = vmul.f32 %v991_v47, %v991_v47 }
 0x5e5   :  { %996 = vadd.xlane.f32.xlu1 %v995_v48 }
 0x5e6   :  { %v1005_v49 = vsel %vm155_vm0, %v1003_v39, 0.0 }
 0x5e7   :  { %1006 = vadd.xlane.f32.xlu0 %v1005_v49 }
 0x5f5   :  { %v988_v11 = vpop.f32.mrf.mxu3 }
 0x5f6   :  { %v989_v51 = vadd.f32 %v1133_v45, %v988_v11 }
 0x5f8   :  { %v992_v52 = vadd.f32 %v989_v51, %v909_v33 }
 0x5fa   :  { %v998_v53 = vsel %vm155_vm0, %v992_v52, 0.0  ;;  %v1004_v54 = vmul.f32 %v992_v52, %v992_v52 }
 0x5fb   :  { %999 = vadd.xlane.f32.xlu0 %v998_v53 }
 0x5fc   :  { %v1008_v55 = vsel %vm155_vm0, %v1004_v54, 0.0 }
 0x603   :  { %1009 = vadd.xlane.f32.xlu0 %v1008_v55 }
 0x658   :  { %v997_v56 = vpop.xlane.xlu1 %996 }
 0x659   :  { %v1001_v57 = vmul.f32 %v997_v56, %v1637_v50 }
 0x65a   :  { %v1007_v58 = vpop.xlane.xlu0 %1006 }
 0x65b   :  { %v1013_v59 = vmul.f32 %v1001_v57, %v1001_v57  ;;  %v1011_v60 = vmul.f32 %v1007_v58, %v1637_v50  ;;  %v1017_v6 = vsub.f32 %v991_v47, %v1001_v57 }
 0x65d   :  { %v1015_v61 = vsub.f32 %v1011_v60, %v1013_v59 }
 0x65f   :  { %v1019_v62 = vadd.f32 1e-05, %v1015_v61 }
 0x661   :  { %1174 = vrsqrt.f32 %v1019_v62  ;;  %vm1027_vm13 = vweird.f32 %v1019_v62 }
 0x667   :  { %v1175_v63 = vpop.eup %1174 }
 0x668   :  { %v1022_v0 = vmul.f32 %v1175_v63, %v1019_v62  ;;  %vm1028_vm12 = vweird.f32 %v1175_v63 }
 0x669   :  { %vm1029_vm14 = vmor %vm1027_vm13, %vm1028_vm12 }
 0x66a   :  { %v1023_v1 = vmul.f32 %v1175_v63, %v1022_v0 }
 0x66c   :  { %v1024_v2 = vmul.f32 0.5, %v1023_v1 }
 0x66e   :  { %v1025_v3 = vsub.f32 1.5, %v1024_v2  ;;  %v1000_v4 = vpop.xlane.xlu0 %999 }
 0x66f   :  { %v1002_v12 = vmul.f32 %v1000_v4, %v1637_v50 }
 0x670   :  { %v1026_v5 = vmul.f32 %v1175_v63, %v1025_v3 }
 0x671   :  { %v1014_v16 = vmul.f32 %v1002_v12, %v1002_v12  ;;  %v1018_v27 = vsub.f32 %v992_v52, %v1002_v12 }
 0x672   :  { %v1030_v8 = vsel %vm1029_vm14, %v1175_v63, %v1026_v5 }
 0x673   :  { %v1041_v10 = vmul.f32 %v1030_v8, %v1017_v6 }
 0x675   :  { %v1046_v14 = vmul.f32 %v1134_v7, %v1041_v10 }
 0x676   :  { %v1010_v15 = vpop.xlane.xlu0 %1009 }
 0x677   :  { %v1012_v17 = vmul.f32 %v1010_v15, %v1637_v50  ;;  %v1051_v18 = vadd.f32 %v1135_v13, %v1046_v14 }
 0x679   :  { %v1016_v19 = vsub.f32 %v1012_v17, %v1014_v16  ;;  %1053 = vst.msk [vmem:[#allocation11] sm:$0xff] %vm155_vm0, %v1051_v18 }
 0x67b   :  { %v1020_v20 = vadd.f32 1e-05, %v1016_v19 }
 0x67d   :  { %1176 = vrsqrt.f32 %v1020_v20  ;;  %vm1037_vm1 = vweird.f32 %v1020_v20 }
 0x683   :  { %v1177_v21 = vpop.eup %1176 }
 0x684   :  { %v1032_v22 = vmul.f32 %v1177_v21, %v1020_v20  ;;  %vm1038_vm15 = vweird.f32 %v1177_v21 }
 0x685   :  { %vm1039_vm2 = vmor %vm1037_vm1, %vm1038_vm15 }
 0x686   :  { %v1033_v23 = vmul.f32 %v1177_v21, %v1032_v22 }
 0x688   :  { %v1034_v24 = vmul.f32 0.5, %v1033_v23 }
 0x68a   :  { %v1035_v25 = vsub.f32 1.5, %v1034_v24 }
 0x68c   :  { %v1036_v26 = vmul.f32 %v1177_v21, %v1035_v25 }
 0x68e   :  { %v1040_v28 = vsel %vm1039_vm2, %v1177_v21, %v1036_v26 }
 0x68f   :  { %v1042_v29 = vmul.f32 %v1040_v28, %v1018_v27 }
 0x691   :  { %v1047_v50 = vmul.f32 %v1134_v7, %v1042_v29 }
 0x693   :  { %v1052_v30 = vadd.f32 %v1135_v13, %v1047_v50 }
 0x695   :  { %1054 = vst.msk [vmem:[#allocation11 + $0x8] sm:$0xff] %vm155_vm0, %v1052_v30 }
 0x696   :  { %1067 = dma.vmem_to_hbm [thread:$0]  %s1060_s18, 256, %s1062_s30, [#allocation4], %s1331_s25, %s1331_s25, %s1332_s3  }
 0x697   :  { %1328 = dma.done.wait [#allocation4], 256  }
 0x698   :  { %1329 = vsyncadd [#allocation4], 4294967040 }
 0x699   :  { %1072 = vsyncpa [#allocation3], 1 }
 0x69a   :  { %1073 = vsyncpa [#allocation6], 1 }
 0x69b   :  { %1074 = vsyncpa [#allocation9], 1 }
 0x69c   :  { %1075 = vsyncpa [#allocation4], 1 }

</bundles_post_ra>
